<compile_context>
chip_gen: v7x
topology: tpu7x:2x2x1
jax: 0.10.0
libtpu: 0.0.40
codegen_flags: <defaults>
</compile_context>

<pallas_src>
from functools import partial

import jax
import jax.numpy as jnp
from jax.experimental import pallas as pl
from jax.experimental.pallas import tpu as pltpu


_LANE_CHOICES = (1024, 512, 256, 128)   # lane-dense widths (multiples of 128)
_TARGET_BLOCK_BYTES = 2 << 20           # per input array per grid step (4 MiB/step total)


def as_complex(x):
    """JAX port of deepfilternet's as_complex (complex passthrough or (...,2) real)."""
    x = jnp.asarray(x)
    if jnp.issubdtype(x.dtype, jnp.complexfloating):
        return x
    if x.shape[-1] != 2:
        raise ValueError("Last dimension need to be of length 2 (re + im)")
    return jax.lax.complex(x[..., 0].astype(jnp.float32), x[..., 1].astype(jnp.float32))


def _interleaved_f32(x):
    """Flat f32 view of a complex (or (...,2) real) array, interleaved [re, im, ...].

    For complex64 inputs this is a pure byte reinterpret (no extra HBM pass); the
    kernel pairs re/im lanes internally, so no split planes are ever materialized.
    """
    x = jnp.asarray(x)
    if jnp.issubdtype(x.dtype, jnp.complexfloating):
        x = x.astype(jnp.complex64)
        try:
            f = jax.lax.bitcast_convert_type(x, jnp.float32)     # (..., 2), free
        except Exception:
            # Backend without complex bitcast support: one fused materializing pass.
            f = jnp.stack([jnp.real(x), jnp.imag(x)], axis=-1)
        return f.reshape(-1)
    if x.shape[-1] != 2:
        raise ValueError("Last dimension need to be of length 2 (re + im)")
    return x.astype(jnp.float32).reshape(-1)


def _make_spectral_kernel(*, gamma, f_c, f_u, tm, W, R, n_inner, acc_rows, need_mask):
    """Kernel factory: hyper-params and tiling are baked in as Python constants."""
    gamma = float(gamma)
    f_c = float(f_c)
    f_u = float(f_u)
    use_gamma = gamma != 1.0
    use_cx = f_c > 0.0
    use_under = f_u != 1.0

    def reduce_rows(t):
        # Row reduction kept on the VPU: fold the tile into (acc_rows, W) slabs
        # with plain vreg adds; the final 8->1 / cross-lane reduce happens in JAX.
        if acc_rows == 8:
            return jnp.sum(t.reshape(tm // 8, 8, W), axis=0)
        return jnp.sum(t, axis=0, keepdims=True)

    def kernel(x_ref, y_ref, acc_m_ref, acc_c_ref):
        p = pl.program_id(0)          # TensorCore split ("parallel")
        i = pl.program_id(1)          # sequential row-block axis ("arbitrary")

        @pl.when(i == 0)
        def _init():
            acc_m_ref[...] = jnp.zeros_like(acc_m_ref)
            acc_c_ref[...] = jnp.zeros_like(acc_c_ref)

        x = x_ref[...]                # interleaved [re, im, re, im, ...] along lanes
        y = y_ref[...]

        lane = jax.lax.broadcasted_iota(jnp.int32, (1, W), 1)
        is_even = (lane & 1) == 0     # (1, W) parity mask, broadcast along sublanes

        def pair_abs2(v):
            # |pair|^2 replicated at both lanes of the pair: partner lane fetched
            # with an XLU lane rotation (rolls never cross a re/im pair because W
            # is even and every row starts on an even flat offset).
            sq = v * v
            nxt = pltpu.roll(sq, shift=W - 1, axis=1)   # lane l -> sq[l + 1]
            prv = pltpu.roll(sq, shift=1, axis=1)       # lane l -> sq[l - 1]
            return sq + jnp.where(is_even, nxt, prv)

        ax = pair_abs2(x)
        ay = pair_abs2(y)

        if use_gamma:
            # clamp_min(|.|,1e-12)**gamma == exp(0.5*gamma*log(max(|.|^2, 1e-24)))
            lx = jnp.log(jnp.maximum(ax, 1e-24))
            ly = jnp.log(jnp.maximum(ay, 1e-24))
            gx = jnp.exp((0.5 * gamma) * lx)
            gy = jnp.exp((0.5 * gamma) * ly)
        else:
            gx = jnp.sqrt(ax)
            gy = jnp.sqrt(ay)

        dmag = gx - gy
        tmag = dmag * dmag            # each complex element counted at both lanes
        if use_under:
            tmag = tmag * jnp.where(gx < gy, jnp.float32(f_u), jnp.float32(1.0))

        if use_cx:
            if use_gamma:
                # re-polarized component: |x|^gamma * x/|x| == |x|^(gamma-1) * x
                # (reuses log(|x|^2); deviation from torch's clamp/angle(0)=0
                #  convention only for |x| < 1e-12, i.e. O(1e-7) absolute).
                sx = jnp.exp((0.5 * gamma - 0.5) * lx)
                sy = jnp.exp((0.5 * gamma - 0.5) * ly)
                dcx = sx * x - sy * y
            else:
                dcx = x - y           # view_as_real MSE is purely per-float here
            tcx = dcx * dcx

        if need_mask:
            # Ragged last row-block and/or duplicated (clamped) blocks of the
            # 2-core split: zero the contribution of rows past the valid range.
            base = (p * n_inner + i) * tm
            rid = base + jax.lax.broadcasted_iota(jnp.int32, (tm, 1), 0)
            rmask = rid < R
            tmag = jnp.where(rmask, tmag, 0.0)
            if use_cx:
                tcx = jnp.where(rmask, tcx, 0.0)

        acc_m_ref[...] += reduce_rows(tmag)[None]
        if use_cx:
            acc_c_ref[...] += reduce_rows(tcx)[None]

    return kernel


def _spectral_loss_pallas(flat_in, flat_tg, *, gamma, f_m, f_c, f_u):
    total = int(flat_in.shape[0])       # f32 scalars per array (= 2 * n_complex)
    n_complex = total // 2

    W = next((w for w in _LANE_CHOICES if total % w == 0), None)
    if W is None:
        # TODO(synk): odd sizes fall back to a zero-pad (one extra HBM copy); the
        # padding is loss-neutral because input and target pad identically.
        W = 128
        pad = (-total) % W
        flat_in = jnp.pad(flat_in, (0, pad))
        flat_tg = jnp.pad(flat_tg, (0, pad))
        total += pad

    R = total // W
    xs = flat_in.reshape(R, W)          # free reshape of contiguous data
    ys = flat_tg.reshape(R, W)

    tm_target = max(8, _TARGET_BLOCK_BYTES // (4 * W))
    tm = R if R <= tm_target else tm_target          # tm is a multiple of 8 or == R
    n_blocks = pl.cdiv(R, tm)
    n_cores = 2 if n_blocks >= 2 else 1              # v7x: one half per TensorCore
    n_inner = pl.cdiv(n_blocks, n_cores)
    acc_rows = 8 if tm % 8 == 0 else 1
    need_mask = (n_blocks * tm != R) or (n_cores * n_inner != n_blocks)

    kernel = _make_spectral_kernel(gamma=gamma, f_c=f_c, f_u=f_u, tm=tm, W=W, R=R,
                                   n_inner=n_inner, acc_rows=acc_rows,
                                   need_mask=need_mask)

    def in_map(p, i):
        # Clamp so the (possibly unbalanced) 2-core split never indexes past the
        # last block; clamped duplicates are fully masked out inside the kernel.
        return (jnp.minimum(p * n_inner + i, n_blocks - 1), 0)

    def acc_map(p, i):
        return (p, 0, 0)               # per-core accumulator, resident across i

    t_per_lane = 3 if (gamma != 1.0 and f_c > 0.0) else (2 if gamma != 1.0 else 1)
    cost = pl.CostEstimate(flops=50 * total,
                           transcendentals=2 * t_per_lane * total,
                           bytes_accessed=8 * total)

    acc_m, acc_c = pl.pallas_call(
        kernel,
        out_shape=(jax.ShapeDtypeStruct((n_cores, acc_rows, W), jnp.float32),
                   jax.ShapeDtypeStruct((n_cores, acc_rows, W), jnp.float32)),
        grid=(n_cores, n_inner),
        in_specs=[pl.BlockSpec((tm, W), in_map),
                  pl.BlockSpec((tm, W), in_map)],
        out_specs=(pl.BlockSpec((1, acc_rows, W), acc_map),
                   pl.BlockSpec((1, acc_rows, W), acc_map)),
        compiler_params=pltpu.CompilerParams(
            dimension_semantics=("parallel", "arbitrary"),
            vmem_limit_bytes=48 << 20),
        cost_estimate=cost,
    )(xs, ys)

    # Tiny epilogue in plain JAX: cross-core / sublane / lane reduction + factors.
    # Each complex element was counted at both of its lanes -> the 0.5 factor.
    scale = 0.5 / float(n_complex)
    loss = jnp.sum(acc_m) * (f_m * scale)
    if f_c > 0.0:
        loss = loss + jnp.sum(acc_c) * (f_c * scale)
    return loss


@partial(jax.jit, static_argnames=("gamma", "f_m", "f_c", "f_u"))
def _spectral_loss_jit(input, target, *, gamma, f_m, f_c, f_u):
    flat_in = _interleaved_f32(input)
    flat_tg = _interleaved_f32(target)
    if flat_in.shape != flat_tg.shape:
        raise ValueError("input and target must have the same shape")
    return _spectral_loss_pallas(flat_in, flat_tg,
                                 gamma=gamma, f_m=f_m, f_c=f_c, f_u=f_u)


class SpectralLoss:
    """JAX/Pallas port of deepfilternet df.loss.SpectralLoss (forward only)."""

    def __init__(self, gamma: float = 1.0, factor_magnitude: float = 1.0,
                 factor_complex: float = 1.0, factor_under: float = 1.0):
        self.gamma = float(gamma)
        self.f_m = float(factor_magnitude)
        self.f_c = float(factor_complex)
        self.f_u = float(factor_under)

    def __call__(self, input, target):
        return _spectral_loss_jit(input, target, gamma=self.gamma, f_m=self.f_m,
                                  f_c=self.f_c, f_u=self.f_u)


def _reference_spectral_loss(input, target, gamma, f_m, f_c, f_u):
    """Pure-JAX reference mirroring the torch module (no Pallas)."""
    inp = as_complex(input)
    tgt = as_complex(target)
    input_abs = jnp.abs(inp)
    target_abs = jnp.abs(tgt)
    if gamma != 1:
        input_abs = jnp.power(jnp.maximum(input_abs, 1e-12), gamma)
        target_abs = jnp.power(jnp.maximum(target_abs, 1e-12), gamma)
    tmp = (input_abs - target_abs) ** 2
    if f_u != 1:
        tmp = tmp * jnp.where(input_abs < target_abs, f_u, 1.0)
    loss = jnp.mean(tmp) * f_m
    if f_c > 0:
        if gamma != 1:
            inp = input_abs * jnp.exp(1j * jnp.angle(inp))
            tgt = target_abs * jnp.exp(1j * jnp.angle(tgt))
        in_r = jnp.stack([jnp.real(inp), jnp.imag(inp)], axis=-1)
        tg_r = jnp.stack([jnp.real(tgt), jnp.imag(tgt)], axis=-1)
        loss = loss + jnp.mean((in_r - tg_r) ** 2) * f_c
    return loss


if __name__ == "__main__":
    def make_pair(key, shape):
        k1, k2, k3, k4 = jax.random.split(key, 4)
        inp = (jax.random.normal(k1, shape)
               + 1j * jax.random.normal(k2, shape)).astype(jnp.complex64)
        tgt = (jax.random.normal(k3, shape)
               + 1j * jax.random.normal(k4, shape)).astype(jnp.complex64)
        return inp, tgt

    key = jax.random.PRNGKey(0)
    k_small, k_big = jax.random.split(key)

    cases = [
        ((2, 4, 16, 33), k_small),    # small spectrogram: single-block path
        ((4, 4, 128, 257), k_big),    # multi-block: dual-core split + ragged-tail mask
    ]
    configs = [
        dict(),                                                           # torch defaults
        dict(gamma=0.6, factor_magnitude=1000.0, factor_complex=500.0,
             factor_under=2.0),                                           # DeepFilterNet-style
        dict(gamma=0.3, factor_magnitude=2.0, factor_complex=0.0),        # magnitude-only
        dict(factor_under=0.5),                                           # f_u only, gamma=1
    ]

    for shape, k in cases:
        inp, tgt = make_pair(k, shape)
        for cfg in configs:
            mod = SpectralLoss(**cfg)
            out = jax.block_until_ready(mod(inp, tgt))
            ref = _reference_spectral_loss(inp, tgt, mod.gamma, mod.f_m, mod.f_c, mod.f_u)
            assert out.shape == (), out.shape
            assert jnp.allclose(out, ref, rtol=2e-3, atol=1e-5), \
                (shape, cfg, float(out), float(ref))

    # (...,2) real-valued (view_as_real style) inputs follow the same kernel path.
    inp, tgt = make_pair(k_small, (2, 4, 16, 33))
    inp_r = jnp.stack([jnp.real(inp), jnp.imag(inp)], axis=-1)
    tgt_r = jnp.stack([jnp.real(tgt), jnp.imag(tgt)], axis=-1)
    mod = SpectralLoss(gamma=0.6, factor_magnitude=1000.0, factor_complex=500.0,
                       factor_under=2.0)
    out_c = jax.block_until_ready(mod(inp, tgt))
    out_r = jax.block_until_ready(mod(inp_r, tgt_r))
    assert jnp.allclose(out_c, out_r, rtol=1e-5, atol=1e-6), (float(out_c), float(out_r))

    print("KERNEL_OK")
</pallas_src>

<mosaic_0001>
module attributes {stable_mosaic.version = 11 : i64} {
  func.func @kernel(%arg0: i32, %arg1: i32, %arg2: memref<33x256xf32, #tpu.memory_space<vmem>>, %arg3: memref<33x256xf32, #tpu.memory_space<vmem>>, %arg4: memref<1x1x256xf32, #tpu.memory_space<vmem>>, %arg5: memref<1x1x256xf32, #tpu.memory_space<vmem>>) attributes {dimension_semantics = [#tpu.dimension_semantics<parallel>, #tpu.dimension_semantics<arbitrary>], iteration_bounds = array<i64: 1, 1>, scalar_prefetch = 0 : i64, scratch_operands = 0 : i64, tpu.core_type = #tpu.core_type<tc>, window_params = [{transform_indices = @transform_0, window_bounds = array<i64: 33, 256>}, {transform_indices = @transform_1, window_bounds = array<i64: 33, 256>}, {transform_indices = @transform_2, window_bounds = array<i64: 1, 1, 256>}, {transform_indices = @transform_3, window_bounds = array<i64: 1, 1, 256>}]} {
    %c0_i32 = arith.constant 0 : i32
    %0 = arith.cmpi eq, %arg1, %c0_i32 : i32
    %1 = arith.extui %0 : i1 to i32
    %c0_i32_0 = arith.constant 0 : i32
    %2 = arith.cmpi ne, %1, %c0_i32_0 : i32
    scf.if %2 {
      %cst_21 = arith.constant 0.000000e+00 : f32
      %42 = vector.broadcast %cst_21 : f32 to vector<1x1x256xf32>
      %c0_22 = arith.constant 0 : index
      %c0_23 = arith.constant 0 : index
      %c0_24 = arith.constant 0 : index
      %43 = vector.load %arg4[%c0_22, %c0_23, %c0_24] : memref<1x1x256xf32, #tpu.memory_space<vmem>>, vector<1x1x256xf32>
      tpu.vector_store %arg4[%c0_22, %c0_23, %c0_24], %42 {strides = array<i32>} : memref<1x1x256xf32, #tpu.memory_space<vmem>>, vector<1x1x256xf32>,
      %cst_25 = arith.constant 0.000000e+00 : f32
      %44 = vector.broadcast %cst_25 : f32 to vector<1x1x256xf32>
      %c0_26 = arith.constant 0 : index
      %c0_27 = arith.constant 0 : index
      %c0_28 = arith.constant 0 : index
      %45 = vector.load %arg5[%c0_26, %c0_27, %c0_28] : memref<1x1x256xf32, #tpu.memory_space<vmem>>, vector<1x1x256xf32>
      tpu.vector_store %arg5[%c0_26, %c0_27, %c0_28], %44 {strides = array<i32>} : memref<1x1x256xf32, #tpu.memory_space<vmem>>, vector<1x1x256xf32>,
    } else {
    }
    %c0 = arith.constant 0 : index
    %c0_1 = arith.constant 0 : index
    %3 = vector.load %arg2[%c0, %c0_1] : memref<33x256xf32, #tpu.memory_space<vmem>>, vector<33x256xf32>
    %c0_2 = arith.constant 0 : index
    %c0_3 = arith.constant 0 : index
    %4 = vector.load %arg3[%c0_2, %c0_3] : memref<33x256xf32, #tpu.memory_space<vmem>>, vector<33x256xf32>
    %5 = tpu.iota {dimensions = array<i32: 1>} : vector<1x256xi32>
    %c1_i32 = arith.constant 1 : i32
    %6 = vector.broadcast %c1_i32 : i32 to vector<1x256xi32>
    %7 = arith.andi %5, %6 : vector<1x256xi32>
    %c0_i32_4 = arith.constant 0 : i32
    %8 = vector.broadcast %c0_i32_4 : i32 to vector<1x256xi32>
    %9 = arith.cmpi eq, %7, %8 : vector<1x256xi32>
    %10 = arith.mulf %3, %3 : vector<33x256xf32>
    %c255_i32 = arith.constant 255 : i32
    %11 = tpu.dynamic_rotate %10 by %c255_i32 dim 1 : vector<33x256xf32>, i32 -> vector<33x256xf32>
    %c1_i32_5 = arith.constant 1 : i32
    %12 = tpu.dynamic_rotate %10 by %c1_i32_5 dim 1 : vector<33x256xf32>, i32 -> vector<33x256xf32>
    %13 = vector.shape_cast %9 : vector<1x256xi1> to vector<1x256xi1>
    %14 = vector.broadcast %13 : vector<1x256xi1> to vector<33x256xi1>
    %15 = arith.select %14, %11, %12 : vector<33x256xi1>, vector<33x256xf32>
    %16 = arith.addf %10, %15 : vector<33x256xf32>
    %17 = arith.mulf %4, %4 : vector<33x256xf32>
    %c255_i32_6 = arith.constant 255 : i32
    %18 = tpu.dynamic_rotate %17 by %c255_i32_6 dim 1 : vector<33x256xf32>, i32 -> vector<33x256xf32>
    %c1_i32_7 = arith.constant 1 : i32
    %19 = tpu.dynamic_rotate %17 by %c1_i32_7 dim 1 : vector<33x256xf32>, i32 -> vector<33x256xf32>
    %20 = vector.shape_cast %9 : vector<1x256xi1> to vector<1x256xi1>
    %21 = vector.broadcast %20 : vector<1x256xi1> to vector<33x256xi1>
    %22 = arith.select %21, %18, %19 : vector<33x256xi1>, vector<33x256xf32>
    %23 = arith.addf %17, %22 : vector<33x256xf32>
    %24 = math.sqrt %16 : vector<33x256xf32>
    %25 = math.sqrt %23 : vector<33x256xf32>
    %26 = arith.subf %24, %25 : vector<33x256xf32>
    %27 = arith.mulf %26, %26 : vector<33x256xf32>
    %28 = arith.subf %3, %4 : vector<33x256xf32>
    %29 = arith.mulf %28, %28 : vector<33x256xf32>
    %c0_8 = arith.constant 0 : index
    %c0_9 = arith.constant 0 : index
    %c0_10 = arith.constant 0 : index
    %30 = vector.load %arg4[%c0_8, %c0_9, %c0_10] : memref<1x1x256xf32, #tpu.memory_space<vmem>>, vector<1x1x256xf32>
    %cst = arith.constant dense<0.000000e+00> : vector<256xf32>
    %31 = vector.multi_reduction <add>, %27, %cst [0] : vector<33x256xf32> to vector<256xf32>
    %32 = vector.shape_cast %31 : vector<256xf32> to vector<1x256xf32>
    %33 = vector.shape_cast %32 : vector<1x256xf32> to vector<1x1x256xf32>
    %34 = arith.addf %30, %33 : vector<1x1x256xf32>
    %c0_11 = arith.constant 0 : index
    %c0_12 = arith.constant 0 : index
    %c0_13 = arith.constant 0 : index
    %35 = vector.load %arg4[%c0_11, %c0_12, %c0_13] : memref<1x1x256xf32, #tpu.memory_space<vmem>>, vector<1x1x256xf32>
    tpu.vector_store %arg4[%c0_11, %c0_12, %c0_13], %34 {strides = array<i32>} : memref<1x1x256xf32, #tpu.memory_space<vmem>>, vector<1x1x256xf32>,
    %c0_14 = arith.constant 0 : index
    %c0_15 = arith.constant 0 : index
    %c0_16 = arith.constant 0 : index
    %36 = vector.load %arg5[%c0_14, %c0_15, %c0_16] : memref<1x1x256xf32, #tpu.memory_space<vmem>>, vector<1x1x256xf32>
    %cst_17 = arith.constant dense<0.000000e+00> : vector<256xf32>
    %37 = vector.multi_reduction <add>, %29, %cst_17 [0] : vector<33x256xf32> to vector<256xf32>
    %38 = vector.shape_cast %37 : vector<256xf32> to vector<1x256xf32>
    %39 = vector.shape_cast %38 : vector<1x256xf32> to vector<1x1x256xf32>
    %40 = arith.addf %36, %39 : vector<1x1x256xf32>
    %c0_18 = arith.constant 0 : index
    %c0_19 = arith.constant 0 : index
    %c0_20 = arith.constant 0 : index
    %41 = vector.load %arg5[%c0_18, %c0_19, %c0_20] : memref<1x1x256xf32, #tpu.memory_space<vmem>>, vector<1x1x256xf32>
    tpu.vector_store %arg5[%c0_18, %c0_19, %c0_20], %40 {strides = array<i32>} : memref<1x1x256xf32, #tpu.memory_space<vmem>>, vector<1x1x256xf32>,
    return
  }
  func.func @transform_0(%arg0: i32, %arg1: i32) -> (i32, i32) {
    %c1_i32 = arith.constant 1 : i32
    %0 = arith.muli %arg0, %c1_i32 : i32
    %1 = arith.addi %0, %arg1 : i32
    %c0_i32 = arith.constant 0 : i32
    %2 = arith.minsi %1, %c0_i32 : i32
    %c0_i32_0 = arith.constant 0 : i32
    %c0_i32_1 = arith.constant 0 : i32
    return %2, %c0_i32_0 : i32, i32
  }
  func.func @transform_1(%arg0: i32, %arg1: i32) -> (i32, i32) {
    %c1_i32 = arith.constant 1 : i32
    %0 = arith.muli %arg0, %c1_i32 : i32
    %1 = arith.addi %0, %arg1 : i32
    %c0_i32 = arith.constant 0 : i32
    %2 = arith.minsi %1, %c0_i32 : i32
    %c0_i32_0 = arith.constant 0 : i32
    %c0_i32_1 = arith.constant 0 : i32
    return %2, %c0_i32_0 : i32, i32
  }
  func.func @transform_2(%arg0: i32, %arg1: i32) -> (i32, i32, i32) {
    %c0_i32 = arith.constant 0 : i32
    %c0_i32_0 = arith.constant 0 : i32
    %c0_i32_1 = arith.constant 0 : i32
    return %arg0, %c0_i32, %c0_i32_0 : i32, i32, i32
  }
  func.func @transform_3(%arg0: i32, %arg1: i32) -> (i32, i32, i32) {
    %c0_i32 = arith.constant 0 : i32
    %c0_i32_0 = arith.constant 0 : i32
    %c0_i32_1 = arith.constant 0 : i32
    return %arg0, %c0_i32, %c0_i32_0 : i32, i32, i32
  }
}

</mosaic_0001>

<bundles_post_ra>
// kernel: custom-call.1
= control target key start
LH: loop header
LB: loop body
LE: loop exit
PB: predicated region body
PF: predicated region fallthrough
CT: control target
= control target key end

     0   :  { %s59_s0 = inlined_call_operand.hbm [shape: c64[2,4,16,33], index: 0, kind: input, shape index: {}]   ;;  %s60_s1 = inlined_call_operand.vmem [shape: f32[2,4,16,33], index: 1, kind: output, shape index: {}]  }
   0x1   :  { %s2_s8 = scalar_lea.hbm %s59_s0, 2048 }
   0x2   :  { %3 = vsyncpa [#allocation0], 0  ;;  %s4_s11 = sshll.u32 %s60_s1, 4  ;;  %s34_s14 = scalar_lea.hbm %s59_s0, 4096  ;;  %s5_s11 = int_to_ptr.vmem [resolvable:$true] %s4_s11 }
   0x3   :  { %p11_p0 = scmp.ne.s32.totalorder %s2_s8, %s34_s14  ;;  %p13_p1 = scmp.lt.u32.totalorder %s2_s8, %s59_s0 }
   0x4   :  { %p14_p2 = scmp.lt.u32.totalorder %s34_s14, %s34_s14  ;;  %p16_p4 = scmp.lt.u32.totalorder %s34_s14, %s2_s8 }
   0x6   :  { %p15_p3 = por %p14_p2, %p13_p1 }
   0x8   :  { %p17_p5 = por %p16_p4, %p15_p3 }
   0xa   :  { %p18_p6 = pnand %p17_p5, %p11_p0 }
   0xc   :  { %21 = shalt.err (!%p18_p6)  }
   0xd   :  { %s22_s17 = scalar_lea.vmem %s5_s11, 2048  ;;  %p27_p8 = scmp.lt.s32.totalorder %s5_s11, %s5_s11 }
   0xe   :  { %p23_p7 = scmp.ne.s32.totalorder %s5_s11, %s22_s17  ;;  %p28_p9 = scmp.lt.s32.totalorder %s22_s17, %s22_s17 }
  0x10   :  { %p29_p10 = por %p28_p9, %p27_p8 }
  0x12   :  { %p30_p11 = pnand %p29_p10, %p23_p7 }
  0x14   :  { %33 = shalt.err (!%p30_p11)  }
  0x15   :  { %7 = dma.hbm_to_vmem [thread:$0]  %s2_s8, 2048, %s5_s11, [#allocation0] }
  0x16   :  { %35 = dma.done.wait [#allocation0], 2048  }
  0x17   :  { %36 = vsyncadd [#allocation0], 4294965248 }
  0x18   :  { %9 = vsyncpa [#allocation0], 1 }

// kernel: custom-call
= control target key start
LH: loop header
LB: loop body
LE: loop exit
PB: predicated region body
PF: predicated region fallthrough
CT: control target
= control target key end

     0   :  { %2 = vsyncpa [#allocation0], 0  ;;  %s61_s0 = inlined_call_operand.hbm [shape: c64[2,4,16,33], index: 0, kind: input, shape index: {}]   ;;  %s62_s1 = inlined_call_operand.vmem [shape: f32[2,4,16,33], index: 1, kind: output, shape index: {}]  }
   0x1   :  { %s3_s8 = sshll.u32 %s62_s1, 4  ;;  %s9_s11 = scalar_lea.hbm %s61_s0, 2048  ;;  %s4_s8 = int_to_ptr.vmem [resolvable:$true] %s3_s8 }
   0x2   :  { %p10_p0 = scmp.ne.s32.totalorder %s61_s0, %s9_s11  ;;  %s11_s16 = scalar_lea.hbm %s61_s0, 4096 }
   0x3   :  { %p12_p1 = scmp.lt.u32.totalorder %s11_s16, %s9_s11  ;;  %p13_p2 = scmp.lt.u32.totalorder %s9_s11, %s61_s0 }
   0x5   :  { %p14_p3 = por %p13_p2, %p12_p1 }
   0x7   :  { %p15_p4 = pnand %p14_p3, %p10_p0 }
   0x9   :  { %18 = shalt.err (!%p15_p4)  }
   0xa   :  { %s19_s1 = scalar_lea.vmem %s4_s8, 2048  ;;  %p24_p6 = scmp.lt.s32.totalorder %s4_s8, %s4_s8 }
   0xb   :  { %p20_p5 = scmp.ne.s32.totalorder %s4_s8, %s19_s1  ;;  %p25_p7 = scmp.lt.s32.totalorder %s19_s1, %s19_s1 }
   0xd   :  { %p26_p8 = por %p25_p7, %p24_p6 }
   0xf   :  { %p27_p9 = pnand %p26_p8, %p20_p5 }
  0x11   :  { %30 = shalt.err (!%p27_p9)  }
  0x12   :  { %6 = dma.hbm_to_vmem [thread:$0]  %s61_s0, 2048, %s4_s8, [#allocation0] }
  0x13   :  { %31 = dma.done.wait [#allocation0], 2048  }
  0x14   :  { %32 = vsyncadd [#allocation0], 4294965248 }
  0x15   :  { %8 = vsyncpa [#allocation0], 1 }

// kernel: _spectral_loss_jit.1
= control target key start
LH: loop header
LB: loop body
LE: loop exit
PB: predicated region body
PF: predicated region fallthrough
CT: control target
= control target key end

     0   :  { %v87_v0 = vlaneseq  ;;  %v641_v13 = vmov 0.0   ;;  %s642_s30 = smov 127   ;;  %s643_s26 = smov 1   ;;  %vm490_vm1 = vcmask 1040384   ;;  %s1292_s0 = inlined_call_operand.vmem [shape: f32[33,256], index: 0, kind: input, shape index: {}]   ;;  %s1293_s1 = inlined_call_operand.vmem [shape: f32[33,256], index: 1, kind: input, shape index: {}]   ;;  %s1294_s2 = inlined_call_operand.vmem [shape: f32[1,1,256], index: 2, kind: output, shape index: {0}]   ;;  %s1295_s3 = inlined_call_operand.vmem [shape: f32[1,1,256], index: 3, kind: output, shape index: {1}]  }
   0x1   :  { %v94_v1 = vld [vmem:[%s1292_s0 + $0x8] sm:$0xff]  ;;  %v93_v2 = vld [vmem:[%s1292_s0] sm:$0xff]  ;;  %v96_v3 = vld [vmem:[%s1292_s0 + $0x18] sm:$0xff] }
   0x2   :  { %v674_v4 = vmul.f32 %v94_v1, %v94_v1  ;;  %v676_v5 = vmul.f32 %v93_v2, %v93_v2  ;;  %v95_v6 = vld [vmem:[%s1292_s0 + $0x10] sm:$0xff]  ;;  %vm685_vm0 = vcmp.lt.s32.totalorder %v87_v0, 256  ;;  %v689_v9 = vmul.f32 %v96_v3, %v96_v3  ;;  %v103_v11 = vld [vmem:[%s1293_s1] sm:$0xff]  ;;  %v106_v12 = vld [vmem:[%s1293_s1 + $0x18] sm:$0xff] }
   0x3   :  { %v105_v7 = vld [vmem:[%s1293_s1 + $0x10] sm:$0xff]  ;;  %91 = vst.msk [vmem:[%s1294_s2] sm:$0x3] %vm685_vm0, %v641_v13  ;;  %92 = vst.msk [vmem:[%s1295_s3] sm:$0x3] %vm685_vm0, %v641_v13  ;;  %v711_v14 = vmul.f32 %v95_v6, %v95_v6  ;;  %v466_v15 = vsub.f32 %v93_v2, %v103_v11  ;;  %v469_v16 = vsub.f32 %v96_v3, %v106_v12  ;;  %v104_v17 = vld [vmem:[%s1293_s1 + $0x8] sm:$0xff] }
   0x4   :  { %v468_v10 = vsub.f32 %v95_v6, %v105_v7  ;;  %140 = vrot.lane.b32.xlu1 %v674_v4, %s642_s30  ;;  %130 = vrot.lane.b32.xlu0 %v676_v5, %s642_s30  ;;  %v467_v19 = vsub.f32 %v94_v1, %v104_v17  ;;  %v719_v20 = vld [vmem:[%s1292_s0 + $0x28] sm:$0xff]  ;;  %v724_v23 = vld [vmem:[%s1292_s0 + $0x20] sm:$0xff]  ;;  %v800_v53 = vmul.f32 %v105_v7, %v105_v7  ;;  %v644_v1 = vmov 1966171168  }
   0x5   :  { %v476_v21 = vmul.f32 %v466_v15, %v466_v15  ;;  %v479_v22 = vmul.f32 %v469_v16, %v469_v16  ;;  %v729_v24 = vld [vmem:[%s1293_s1 + $0x28] sm:$0xff]  ;;  %v734_v25 = vld [vmem:[%s1293_s1 + $0x20] sm:$0xff]  ;;  %v747_v30 = vld [vmem:[%s1292_s0 + $0x38] sm:$0xff]  ;;  %v802_v54 = vmul.f32 %v103_v11, %v103_v11  ;;  %v810_v60 = vmul.f32 %v106_v12, %v106_v12 }
   0x6   :  { %v478_v18 = vmul.f32 %v468_v10, %v468_v10  ;;  %v477_v26 = vmul.f32 %v467_v19, %v467_v19  ;;  %v471_v27 = vsub.f32 %v719_v20, %v729_v24  ;;  %v470_v28 = vsub.f32 %v724_v23, %v734_v25  ;;  %v752_v34 = vld [vmem:[%s1292_s0 + $0x30] sm:$0xff]  ;;  %v757_v35 = vld [vmem:[%s1293_s1 + $0x38] sm:$0xff]  ;;  %v771_v41 = vld [vmem:[%s1292_s0 + $0x48] sm:$0x1] }
   0x7   :  { %v762_v36 = vld [vmem:[%s1293_s1 + $0x30] sm:$0xff]  ;;  %v473_v37 = vsub.f32 %v747_v30, %v757_v35  ;;  %v776_v42 = vld [vmem:[%s1293_s1 + $0x48] sm:$0x1]  ;;  %v785_v45 = vld [vmem:[%s1292_s0 + $0x40] sm:$0x1]  ;;  %v812_v61 = vmul.f32 %v104_v17, %v104_v17  ;;  %v514_v2 = vunpack.c.l.s4 %v644_v1  ;;  %v517_v12 = vshrl.u32 %v87_v0, 7 }
   0x8   :  { %142 = vrot.lane.b32.xlu1 %v689_v9, %s642_s30  ;;  %132 = vrot.lane.b32.xlu0 %v711_v14, %s642_s30  ;;  %v535_v29 = vadd.f32 %v478_v18, %v476_v21  ;;  %v546_v31 = vadd.f32 %v479_v22, %v477_v26  ;;  %v481_v32 = vmul.f32 %v471_v27, %v471_v27  ;;  %v792_v47 = vld [vmem:[%s1293_s1 + $0x40] sm:$0x1] }
   0x9   :  { %v480_v33 = vmul.f32 %v470_v28, %v470_v28  ;;  %v472_v38 = vsub.f32 %v752_v34, %v762_v36  ;;  %v483_v43 = vmul.f32 %v473_v37, %v473_v37  ;;  %v475_v46 = vsub.f32 %v771_v41, %v776_v42 }
   0xa   :  { %v547_v39 = vadd.f32 %v546_v31, %v481_v32  ;;  %v474_v48 = vsub.f32 %v785_v45, %v792_v47  ;;  %v515_v11 = vunpack.c.0.s8 %v514_v2  ;;  %v831_v21 = vmul.f32 %v719_v20, %v719_v20  ;;  %v534_v28 = vld [vmem:[%s1295_s3] sm:$0x3] }
   0xb   :  { %v536_v40 = vadd.f32 %v535_v29, %v480_v33  ;;  %v482_v44 = vmul.f32 %v472_v38, %v472_v38  ;;  %v485_v51 = vmul.f32 %v475_v46, %v475_v46  ;;  %v835_v22 = vmul.f32 %v724_v23, %v724_v23 }
   0xc   :  { %163 = vrot.lane.b32.xlu1 %v711_v14, %s643_s26  ;;  %161 = vrot.lane.b32.xlu0 %v676_v5, %s643_s26  ;;  %v548_v49 = vadd.f32 %v547_v39, %v483_v43  ;;  %v484_v52 = vmul.f32 %v474_v48, %v474_v48  ;;  %v823_v18 = vsub.s32 %v515_v11, %v517_v12  ;;  %v936_v37 = vand.u32 127, %v87_v0 }
   0xd   :  { %v537_v50 = vadd.f32 %v536_v40, %v482_v44  ;;  %v549_v55 = vsel %vm490_vm1, %v485_v51, 0.0  ;;  %v852_v23 = vmul.f32 %v729_v24, %v729_v24  ;;  %v856_v31 = vmul.f32 %v734_v25, %v734_v25 }
   0xe   :  { %v550_v56 = vadd.f32 %v549_v55, %v548_v49  ;;  %v538_v57 = vsel %vm490_vm1, %v484_v52, 0.0  ;;  %v873_v24 = vmul.f32 %v747_v30, %v747_v30  ;;  %v877_v25 = vmul.f32 %v752_v34, %v752_v34 }
   0xf   :  { %v539_v58 = vadd.f32 %v538_v57, %v537_v50  ;;  %v889_v30 = vmul.f32 %v757_v35, %v757_v35  ;;  %v893_v32 = vmul.f32 %v762_v36, %v762_v36  ;;  %v905_v33 = vmul.f32 %v771_v41, %v771_v41 }
  0x10   :  { %173 = vrot.lane.b32.xlu1 %v689_v9, %s643_s26  ;;  %171 = vrot.lane.b32.xlu0 %v674_v4, %s643_s26  ;;  %v551_v59 = vrot.slane %v550_v56, 4  ;;  %v909_v34 = vmul.f32 %v785_v45, %v785_v45  ;;  %v921_v35 = vmul.f32 %v776_v42, %v776_v42  ;;  %v925_v36 = vmul.f32 %v792_v47, %v792_v47 }
  0x11   :  { %v540_v62 = vrot.slane %v539_v58, 4  ;;  %vm150_vm2 = vcmp.lt.s32.totalorder %v936_v37, 127  ;;  %v115_v42 = vadd.s32 128, %v936_v37  ;;  %v116_v46 = vand.u32 1, %v936_v37 }
  0x12   :  { %v552_v63 = vadd.f32 %v551_v59, %v550_v56  ;;  %vm181_vm3 = vcmp.lt.s32.totalorder %v936_v37, 1 }
  0x13   :  { %v541_v3 = vadd.f32 %v540_v62, %v539_v58  ;;  %v117_v47 = vand.u32 1, %v115_v42  ;;  %vm950_vm4 = vcmp.eq.s32.totalorder %v116_v46, 0 }
  0x14   :  { %228 = vrot.lane.b32.xlu1 %v800_v53, %s642_s30  ;;  %226 = vrot.lane.b32.xlu0 %v802_v54, %s642_s30  ;;  %v553_v6 = vrot.slane %v552_v63, 2 }
  0x15   :  { %v542_v7 = vrot.slane %v541_v3, 2  ;;  %vm954_vm5 = vcmp.eq.s32.totalorder %v117_v47, 0 }
  0x16   :  { %v554_v10 = vadd.f32 %v553_v6, %v552_v63 }
  0x17   :  { %v543_v13 = vadd.f32 %v542_v7, %v541_v3 }
  0x18   :  { %238 = vrot.lane.b32.xlu1 %v810_v60, %s642_s30  ;;  %236 = vrot.lane.b32.xlu0 %v812_v61, %s642_s30  ;;  %v555_v15 = vrot.slane %v554_v10, 1 }
  0x19   :  { %v544_v16 = vrot.slane %v543_v13, 1 }
  0x1a   :  { %v556_v17 = vadd.f32 %v555_v15, %v554_v10 }
  0x1b   :  { %v545_v19 = vadd.f32 %v544_v16, %v543_v13 }
  0x1c   :  { %258 = vrot.lane.b32.xlu1 %v800_v53, %s643_s26  ;;  %256 = vrot.lane.b32.xlu0 %v802_v54, %s643_s26 }
  0x1d   :  { %v559_v26 = vcombine.low %v545_v19, %v556_v17 }
  0x1f   :  { %v566_v27 = vrot.slane %v559_v26, %v823_v18 }
  0x20   :  { %268 = vrot.lane.b32.xlu1 %v810_v60, %s643_s26  ;;  %266 = vrot.lane.b32.xlu0 %v812_v61, %s643_s26 }
  0x21   :  { %v573_v20 = vrot.slane %v566_v27, %v823_v18 }
  0x23   :  { %v575_v29 = vadd.f32 %v573_v20, %v534_v28 }
  0x24   :  { %144 = vrot.lane.b32.xlu1 %v831_v21, %s642_s30  ;;  %134 = vrot.lane.b32.xlu0 %v835_v22, %s642_s30 }
  0x25   :  { %576 = vst.msk [vmem:[%s1295_s3] sm:$0x3] %vm685_vm0, %v575_v29 }
  0x28   :  { %175 = vrot.lane.b32.xlu1 %v831_v21, %s643_s26  ;;  %165 = vrot.lane.b32.xlu0 %v835_v22, %s643_s26 }
  0x2c   :  { %240 = vrot.lane.b32.xlu1 %v852_v23, %s642_s30  ;;  %230 = vrot.lane.b32.xlu0 %v856_v31, %s642_s30 }
  0x30   :  { %270 = vrot.lane.b32.xlu1 %v852_v23, %s643_s26  ;;  %260 = vrot.lane.b32.xlu0 %v856_v31, %s643_s26 }
  0x34   :  { %146 = vrot.lane.b32.xlu1 %v873_v24, %s642_s30  ;;  %136 = vrot.lane.b32.xlu0 %v877_v25, %s642_s30 }
  0x38   :  { %177 = vrot.lane.b32.xlu1 %v873_v24, %s643_s26  ;;  %167 = vrot.lane.b32.xlu0 %v877_v25, %s643_s26 }
  0x3c   :  { %242 = vrot.lane.b32.xlu1 %v889_v30, %s642_s30  ;;  %232 = vrot.lane.b32.xlu0 %v893_v32, %s642_s30 }
  0x40   :  { %272 = vrot.lane.b32.xlu1 %v889_v30, %s643_s26  ;;  %262 = vrot.lane.b32.xlu0 %v893_v32, %s643_s26 }
  0x44   :  { %148 = vrot.lane.b32.xlu1 %v905_v33, %s642_s30  ;;  %138 = vrot.lane.b32.xlu0 %v909_v34, %s642_s30 }
  0x48   :  { %179 = vrot.lane.b32.xlu1 %v905_v33, %s643_s26  ;;  %169 = vrot.lane.b32.xlu0 %v909_v34, %s643_s26 }
  0x4c   :  { %244 = vrot.lane.b32.xlu1 %v921_v35, %s642_s30  ;;  %234 = vrot.lane.b32.xlu0 %v925_v36, %s642_s30 }
  0x50   :  { %274 = vrot.lane.b32.xlu1 %v921_v35, %s643_s26  ;;  %264 = vrot.lane.b32.xlu0 %v925_v36, %s643_s26 }
  0x76   :  { %v141_v38 = vpop.permute.xlu1 %140  ;;  %v131_v39 = vpop.permute.xlu0 %130 }
  0x77   :  { %v151_v40 = vsel %vm150_vm2, %v131_v39, %v141_v38  ;;  %v156_v41 = vsel %vm150_vm2, %v141_v38, %v131_v39 }
  0x7a   :  { %v143_v43 = vpop.permute.xlu1 %142  ;;  %v133_v44 = vpop.permute.xlu0 %132 }
  0x7b   :  { %v152_v45 = vsel %vm150_vm2, %v133_v44, %v143_v43  ;;  %v157_v0 = vsel %vm150_vm2, %v143_v43, %v133_v44 }
  0x7e   :  { %v164_v48 = vpop.permute.xlu1 %163  ;;  %v162_v49 = vpop.permute.xlu0 %161 }
  0x82   :  { %v174_v52 = vpop.permute.xlu1 %173  ;;  %v172_v55 = vpop.permute.xlu0 %171 }
  0x83   :  { %v183_v56 = vsel %vm181_vm3, %v164_v48, %v174_v52  ;;  %v188_v57 = vsel %vm181_vm3, %v174_v52, %v164_v48  ;;  %v182_v58 = vsel %vm181_vm3, %v162_v49, %v172_v55  ;;  %v187_v59 = vsel %vm181_vm3, %v172_v55, %v162_v49 }
  0x84   :  { %v198_v62 = vsel %vm950_vm4, %v152_v45, %v188_v57  ;;  %v199_v63 = vsel %vm954_vm5, %v157_v0, %v183_v56  ;;  %v196_v1 = vsel %vm950_vm4, %v151_v40, %v187_v59  ;;  %v197_v2 = vsel %vm954_vm5, %v156_v41, %v182_v58 }
  0x85   :  { %v975_v7 = vadd.f32 %v198_v62, %v711_v14  ;;  %v978_v10 = vadd.f32 %v199_v63, %v689_v9  ;;  %v981_v11 = vadd.f32 %v196_v1, %v676_v5  ;;  %v985_v15 = vadd.f32 %v197_v2, %v674_v4 }
  0x86   :  { %v229_v3 = vpop.permute.xlu1 %228  ;;  %v227_v6 = vpop.permute.xlu0 %226 }
  0x87   :  { %601 = vrsqrt.f32 %v975_v7  ;;  %vm322_vm6 = vcmp.eq.f32.partialorder %v975_v7, inf  ;;  %vm324_vm7 = vcmp.eq.f32.partialorder %v975_v7, 0.0  ;;  %v325_v43 = vand.u32 2147483648, %v975_v7 }
  0x88   :  { %603 = vrsqrt.f32 %v978_v10  ;;  %vm329_vm8 = vcmp.eq.f32.partialorder %v978_v10, inf  ;;  %vm331_vm9 = vcmp.eq.f32.partialorder %v978_v10, 0.0  ;;  %v332_v49 = vand.u32 2147483648, %v978_v10 }
  0x89   :  { %605 = vrsqrt.f32 %v981_v11  ;;  %vm308_vm10 = vcmp.eq.f32.partialorder %v981_v11, inf  ;;  %v311_v58 = vand.u32 2147483648, %v981_v11  ;;  %vm310_vm11 = vcmp.eq.f32.partialorder %v981_v11, 0.0 }
  0x8a   :  { %v239_v12 = vpop.permute.xlu1 %238  ;;  %v237_v13 = vpop.permute.xlu0 %236  ;;  %607 = vrsqrt.f32 %v985_v15  ;;  %vm315_vm12 = vcmp.eq.f32.partialorder %v985_v15, inf  ;;  %vm317_vm13 = vcmp.eq.f32.partialorder %v985_v15, 0.0 }
  0x8b   :  { %v247_v5 = vsel %vm150_vm2, %v229_v3, %v239_v12  ;;  %v252_v19 = vsel %vm150_vm2, %v239_v12, %v229_v3  ;;  %v251_v47 = vsel %vm150_vm2, %v237_v13, %v227_v6 }
  0x8e   :  { %v259_v16 = vpop.permute.xlu1 %258  ;;  %v257_v14 = vpop.permute.xlu0 %256 }
  0x91   :  { %v602_v20 = vpop.eup %601 }
  0x92   :  { %v269_v9 = vpop.permute.xlu1 %268  ;;  %v267_v17 = vpop.permute.xlu0 %266  ;;  %v321_v45 = vmul.f32 %v602_v20, %v975_v7 }
  0x93   :  { %v277_v4 = vsel %vm181_vm3, %v259_v16, %v269_v9  ;;  %v282_v26 = vsel %vm181_vm3, %v269_v9, %v259_v16  ;;  %v604_v38 = vpop.eup %603  ;;  %v281_v40 = vsel %vm181_vm3, %v267_v17, %v257_v14 }
  0x94   :  { %v288_v27 = vsel %vm950_vm4, %v247_v5, %v282_v26  ;;  %v289_v28 = vsel %vm954_vm5, %v252_v19, %v277_v4  ;;  %v606_v44 = vpop.eup %605  ;;  %v328_v46 = vmul.f32 %v604_v38, %v978_v10  ;;  %v323_v1 = vsel %vm322_vm6, %v975_v7, %v321_v45 }
  0x95   :  { %v1003_v29 = vadd.f32 %v288_v27, %v800_v53  ;;  %v1007_v39 = vadd.f32 %v289_v28, %v810_v60  ;;  %v276_v53 = vsel %vm181_vm3, %v257_v14, %v267_v17  ;;  %v246_v60 = vsel %vm150_vm2, %v227_v6, %v237_v13  ;;  %v608_v0 = vpop.eup %607 }
  0x96   :  { %v145_v41 = vpop.permute.xlu1 %144  ;;  %v135_v42 = vpop.permute.xlu0 %134  ;;  %v286_v48 = vsel %vm950_vm4, %v246_v60, %v281_v40  ;;  %v287_v52 = vsel %vm954_vm5, %v251_v47, %v276_v53  ;;  %v314_v2 = vmul.f32 %v608_v0, %v985_v15  ;;  %v326_v9 = vsel %vm324_vm7, %v325_v43, %v323_v1 }
  0x97   :  { %609 = vrsqrt.f32 %v1003_v29  ;;  %v1032_v55 = vadd.f32 %v286_v48, %v802_v54  ;;  %v1036_v59 = vadd.f32 %v287_v52, %v812_v61  ;;  %v307_v54 = vmul.f32 %v606_v44, %v981_v11 }
  0x98   :  { %611 = vrsqrt.f32 %v1007_v39  ;;  %v330_v61 = vsel %vm329_vm8, %v978_v10, %v328_v46  ;;  %v153_v3 = vsel %vm150_vm2, %v135_v42, %v145_v41  ;;  %v158_v6 = vsel %vm150_vm2, %v145_v41, %v135_v42 }
  0x99   :  { %613 = vrsqrt.f32 %v1032_v55  ;;  %v318_v17 = vand.u32 2147483648, %v985_v15  ;;  %v333_v4 = vsel %vm331_vm9, %v332_v49, %v330_v61  ;;  %v309_v26 = vsel %vm308_vm10, %v981_v11, %v307_v54 }
  0x9a   :  { %v176_v56 = vpop.permute.xlu1 %175  ;;  %v166_v57 = vpop.permute.xlu0 %165  ;;  %615 = vrsqrt.f32 %v1036_v59  ;;  %v316_v27 = vsel %vm315_vm12, %v985_v15, %v314_v2  ;;  %vm392_vm14 = vcmp.eq.f32.partialorder %v1003_v29, inf  ;;  %vm394_vm15 = vcmp.eq.f32.partialorder %v1003_v29, 0.0 }
  0x9b   :  { %v184_v62 = vsel %vm181_vm3, %v166_v57, %v176_v56  ;;  %v189_v63 = vsel %vm181_vm3, %v176_v56, %v166_v57  ;;  %vm399_vm6 = vcmp.eq.f32.partialorder %v1007_v39, inf  ;;  %vm401_vm7 = vcmp.eq.f32.partialorder %v1007_v39, 0.0 }
  0x9c   :  { %v200_v12 = vsel %vm950_vm4, %v153_v3, %v189_v63  ;;  %v201_v13 = vsel %vm954_vm5, %v158_v6, %v184_v62  ;;  %v402_v44 = vand.u32 2147483648, %v1007_v39  ;;  %v312_v52 = vsel %vm310_vm11, %v311_v58, %v309_v26 }
  0x9d   :  { %v1067_v5 = vadd.f32 %v200_v12, %v835_v22  ;;  %v1070_v19 = vadd.f32 %v201_v13, %v831_v21  ;;  %v395_v22 = vand.u32 2147483648, %v1003_v29  ;;  %v319_v56 = vsel %vm317_vm13, %v318_v17, %v316_v27 }
  0x9e   :  { %v241_v16 = vpop.permute.xlu1 %240  ;;  %v231_v14 = vpop.permute.xlu0 %230  ;;  %vm378_vm8 = vcmp.eq.f32.partialorder %v1032_v55, inf  ;;  %vm380_vm9 = vcmp.eq.f32.partialorder %v1032_v55, 0.0  ;;  %vm385_vm10 = vcmp.eq.f32.partialorder %v1036_v59, inf  ;;  %vm387_vm11 = vcmp.eq.f32.partialorder %v1036_v59, 0.0 }
  0x9f   :  { %617 = vrsqrt.f32 %v1067_v5  ;;  %v248_v28 = vsel %vm150_vm2, %v231_v14, %v241_v16  ;;  %v253_v41 = vsel %vm150_vm2, %v241_v16, %v231_v14  ;;  %vm336_vm12 = vcmp.eq.f32.partialorder %v1067_v5, inf }
  0xa0   :  { %619 = vrsqrt.f32 %v1070_v19  ;;  %vm338_vm13 = vcmp.eq.f32.partialorder %v1067_v5, 0.0 }
  0xa1   :  { %v610_v7 = vpop.eup %609 }
  0xa2   :  { %v612_v21 = vpop.eup %611  ;;  %v391_v10 = vmul.f32 %v610_v7, %v1003_v29  ;;  %v271_v20 = vpop.permute.xlu1 %270 }
  0xa3   :  { %v261_v38 = vpop.permute.xlu0 %260  ;;  %v398_v40 = vmul.f32 %v612_v21, %v1007_v39  ;;  %v614_v49 = vpop.eup %613 }
  0xa4   :  { %v278_v42 = vsel %vm181_vm3, %v261_v38, %v271_v20  ;;  %v283_v43 = vsel %vm181_vm3, %v271_v20, %v261_v38  ;;  %v393_v53 = vsel %vm392_vm14, %v1003_v29, %v391_v10  ;;  %v616_v1 = vpop.eup %615  ;;  %vm343_vm14 = vcmp.eq.f32.partialorder %v1070_v19, inf }
  0xa5   :  { %v290_v45 = vsel %vm950_vm4, %v248_v28, %v283_v43  ;;  %v291_v60 = vsel %vm954_vm5, %v253_v41, %v278_v42  ;;  %v396_v0 = vsel %vm394_vm15, %v395_v22, %v393_v53  ;;  %v400_v46 = vsel %vm399_vm6, %v1007_v39, %v398_v40 }
  0xa6   :  { %v1109_v47 = vadd.f32 %v290_v45, %v856_v31  ;;  %v1112_v48 = vadd.f32 %v291_v60, %v852_v23  ;;  %v403_v29 = vsel %vm401_vm7, %v402_v44, %v400_v46  ;;  %v448_v57 = vsub.f32 %v326_v9, %v396_v0  ;;  %v147_v62 = vpop.permute.xlu1 %146 }
  0xa7   :  { %v137_v63 = vpop.permute.xlu0 %136  ;;  %v449_v54 = vsub.f32 %v333_v4, %v403_v29  ;;  %v377_v31 = vmul.f32 %v614_v49, %v1032_v55  ;;  %v381_v23 = vand.u32 2147483648, %v1032_v55  ;;  %v384_v11 = vmul.f32 %v616_v1, %v1036_v59 }
  0xa8   :  { %621 = vrsqrt.f32 %v1109_v47  ;;  %v388_v39 = vand.u32 2147483648, %v1036_v59  ;;  %v458_v58 = vmul.f32 %v448_v57, %v448_v57  ;;  %v159_v4 = vsel %vm150_vm2, %v147_v62, %v137_v63 }
  0xa9   :  { %v379_v15 = vsel %vm378_vm8, %v1032_v55, %v377_v31  ;;  %623 = vrsqrt.f32 %v1112_v48  ;;  %v386_v61 = vsel %vm385_vm10, %v1036_v59, %v384_v11  ;;  %v618_v12 = vpop.eup %617  ;;  %v459_v13 = vmul.f32 %v449_v54, %v449_v54 }
  0xaa   :  { %v382_v2 = vsel %vm380_vm9, %v381_v23, %v379_v15  ;;  %v178_v3 = vpop.permute.xlu1 %177  ;;  %v389_v16 = vsel %vm387_vm11, %v388_v39, %v386_v61  ;;  %v154_v55 = vsel %vm150_vm2, %v137_v63, %v147_v62  ;;  %v620_v9 = vpop.eup %619  ;;  %v335_v7 = vmul.f32 %v618_v12, %v1067_v5 }
  0xab   :  { %v168_v6 = vpop.permute.xlu0 %167  ;;  %v446_v14 = vsub.f32 %v312_v52, %v382_v2  ;;  %v447_v17 = vsub.f32 %v319_v56, %v389_v16  ;;  %v342_v28 = vmul.f32 %v620_v9, %v1070_v19  ;;  %v339_v43 = vand.u32 2147483648, %v1067_v5 }
  0xac   :  { %v185_v26 = vsel %vm181_vm3, %v168_v6, %v178_v3  ;;  %v190_v59 = vsel %vm181_vm3, %v178_v3, %v168_v6  ;;  %v346_v44 = vand.u32 2147483648, %v1070_v19  ;;  %vm406_vm15 = vcmp.eq.f32.partialorder %v1109_v47, inf }
  0xad   :  { %v456_v27 = vmul.f32 %v446_v14, %v446_v14  ;;  %v202_v22 = vsel %vm950_vm4, %v154_v55, %v190_v59  ;;  %v203_v21 = vsel %vm954_vm5, %v159_v4, %v185_v26  ;;  %v457_v10 = vmul.f32 %v447_v17, %v447_v17 }
  0xae   :  { %v1148_v20 = vadd.f32 %v202_v22, %v877_v25  ;;  %v1151_v38 = vadd.f32 %v203_v21, %v873_v24  ;;  %v243_v40 = vpop.permute.xlu1 %242  ;;  %vm408_vm6 = vcmp.eq.f32.partialorder %v1109_v47, 0.0  ;;  %v409_v24 = vand.u32 2147483648, %v1109_v47 }
  0xaf   :  { %v233_v41 = vpop.permute.xlu0 %232  ;;  %v487_v42 = vadd.f32 %v458_v58, %v456_v27  ;;  %v499_v53 = vadd.f32 %v459_v13, %v457_v10  ;;  %vm413_vm7 = vcmp.eq.f32.partialorder %v1112_v48, inf  ;;  %v337_v45 = vsel %vm336_vm12, %v1067_v5, %v335_v7 }
  0xb0   :  { %625 = vrsqrt.f32 %v1148_v20  ;;  %v344_v60 = vsel %vm343_vm14, %v1070_v19, %v342_v28  ;;  %v416_v46 = vand.u32 2147483648, %v1112_v48  ;;  %v249_v29 = vsel %vm150_vm2, %v233_v41, %v243_v40 }
  0xb1   :  { %627 = vrsqrt.f32 %v1151_v38  ;;  %v254_v57 = vsel %vm150_vm2, %v243_v40, %v233_v41  ;;  %v340_v11 = vsel %vm338_vm13, %v339_v43, %v337_v45  ;;  %vm345_vm8 = vcmp.eq.f32.partialorder %v1070_v19, 0.0 }
  0xb2   :  { %v622_v25 = vpop.eup %621  ;;  %v273_v49 = vpop.permute.xlu1 %272  ;;  %vm415_vm9 = vcmp.eq.f32.partialorder %v1112_v48, 0.0  ;;  %v347_v6 = vsel %vm345_vm8, %v346_v44, %v344_v60  ;;  %vm350_vm10 = vcmp.eq.f32.partialorder %v1148_v20, inf  ;;  %vm352_vm11 = vcmp.eq.f32.partialorder %v1148_v20, 0.0 }
  0xb3   :  { %v405_v0 = vmul.f32 %v622_v25, %v1109_v47  ;;  %v263_v52 = vpop.permute.xlu0 %262  ;;  %v624_v56 = vpop.eup %623  ;;  %v353_v41 = vand.u32 2147483648, %v1148_v20  ;;  %vm357_vm12 = vcmp.eq.f32.partialorder %v1151_v38, inf  ;;  %vm359_vm13 = vcmp.eq.f32.partialorder %v1151_v38, 0.0 }
  0xb4   :  { %v279_v62 = vsel %vm181_vm3, %v263_v52, %v273_v49  ;;  %v284_v63 = vsel %vm181_vm3, %v273_v49, %v263_v52  ;;  %v412_v54 = vmul.f32 %v624_v56, %v1112_v48 }
  0xb5   :  { %v407_v1 = vsel %vm406_vm15, %v1109_v47, %v405_v0  ;;  %v292_v31 = vsel %vm950_vm4, %v249_v29, %v284_v63  ;;  %v293_v23 = vsel %vm954_vm5, %v254_v57, %v279_v62 }
  0xb6   :  { %v410_v15 = vsel %vm408_vm6, %v409_v24, %v407_v1  ;;  %v1190_v39 = vadd.f32 %v292_v31, %v893_v32  ;;  %v1193_v58 = vadd.f32 %v293_v23, %v889_v30  ;;  %v414_v2 = vsel %vm413_vm7, %v1112_v48, %v412_v54  ;;  %v149_v5 = vpop.permute.xlu1 %148 }
  0xb7   :  { %v450_v61 = vsub.f32 %v340_v11, %v410_v15  ;;  %v139_v3 = vpop.permute.xlu0 %138  ;;  %v417_v47 = vsel %vm415_vm9, %v416_v46, %v414_v2 }
  0xb8   :  { %629 = vrsqrt.f32 %v1190_v39  ;;  %v451_v32 = vsub.f32 %v347_v6, %v417_v47  ;;  %v155_v48 = vsel %vm150_vm2, %v139_v3, %v149_v5  ;;  %v160_v9 = vsel %vm150_vm2, %v149_v5, %v139_v3 }
  0xb9   :  { %v460_v12 = vmul.f32 %v450_v61, %v450_v61  ;;  %631 = vrsqrt.f32 %v1193_v58  ;;  %vm420_vm14 = vcmp.eq.f32.partialorder %v1190_v39, inf  ;;  %vm422_vm15 = vcmp.eq.f32.partialorder %v1190_v39, 0.0 }
  0xba   :  { %v626_v30 = vpop.eup %625  ;;  %v461_v13 = vmul.f32 %v451_v32, %v451_v32  ;;  %v180_v16 = vpop.permute.xlu1 %179  ;;  %vm427_vm6 = vcmp.eq.f32.partialorder %v1193_v58, inf  ;;  %vm429_vm7 = vcmp.eq.f32.partialorder %v1193_v58, 0.0 }
  0xbb   :  { %v488_v19 = vadd.f32 %v487_v42, %v460_v12  ;;  %v170_v14 = vpop.permute.xlu0 %169  ;;  %v628_v55 = vpop.eup %627  ;;  %v349_v7 = vmul.f32 %v626_v30, %v1148_v20  ;;  %v423_v42 = vand.u32 2147483648, %v1190_v39 }
  0xbc   :  { %v186_v17 = vsel %vm181_vm3, %v170_v14, %v180_v16  ;;  %v191_v4 = vsel %vm181_vm3, %v180_v16, %v170_v14  ;;  %v500_v26 = vadd.f32 %v499_v53, %v461_v13  ;;  %v356_v21 = vmul.f32 %v628_v55, %v1151_v38 }
  0xbd   :  { %v204_v59 = vsel %vm950_vm4, %v155_v48, %v191_v4  ;;  %v205_v27 = vsel %vm954_vm5, %v160_v9, %v186_v17  ;;  %v351_v43 = vsel %vm350_vm10, %v1148_v20, %v349_v7  ;;  %v430_v53 = vand.u32 2147483648, %v1193_v58 }
  0xbe   :  { %v1216_v22 = vadd.f32 %v204_v59, %v909_v34  ;;  %v1222_v10 = vadd.f32 %v205_v27, %v905_v33  ;;  %v245_v28 = vpop.permute.xlu1 %244  ;;  %v360_v34 = vand.u32 2147483648, %v1151_v38  ;;  %v358_v25 = vsel %vm357_vm12, %v1151_v38, %v356_v21 }
  0xbf   :  { %v235_v40 = vpop.permute.xlu0 %234  ;;  %v354_v29 = vsel %vm352_vm11, %v353_v41, %v351_v43 }
  0xc0   :  { %633 = vrsqrt.f32 %v1216_v22  ;;  %v250_v45 = vsel %vm150_vm2, %v235_v40, %v245_v28  ;;  %v255_v49 = vsel %vm150_vm2, %v245_v28, %v235_v40  ;;  %v361_v31 = vsel %vm359_vm13, %v360_v34, %v358_v25 }
  0xc1   :  { %635 = vrsqrt.f32 %v1222_v10  ;;  %vm364_vm2 = vcmp.eq.f32.partialorder %v1216_v22, inf  ;;  %v367_v38 = vand.u32 2147483648, %v1216_v22  ;;  %v374_v47 = vand.u32 2147483648, %v1222_v10 }
  0xc2   :  { %v630_v33 = vpop.eup %629  ;;  %v275_v60 = vpop.permute.xlu1 %274 }
  0xc3   :  { %v632_v44 = vpop.eup %631  ;;  %v419_v24 = vmul.f32 %v630_v33, %v1190_v39  ;;  %v265_v0 = vpop.permute.xlu0 %264 }
  0xc4   :  { %v426_v46 = vmul.f32 %v632_v44, %v1193_v58  ;;  %v280_v52 = vsel %vm181_vm3, %v265_v0, %v275_v60  ;;  %v285_v56 = vsel %vm181_vm3, %v275_v60, %v265_v0  ;;  %vm366_vm3 = vcmp.eq.f32.partialorder %v1216_v22, 0.0 }
  0xc5   :  { %v421_v57 = vsel %vm420_vm14, %v1190_v39, %v419_v24  ;;  %v294_v62 = vsel %vm950_vm4, %v250_v45, %v285_v56  ;;  %v295_v63 = vsel %vm954_vm5, %v255_v49, %v280_v52  ;;  %vm371_vm4 = vcmp.eq.f32.partialorder %v1222_v10, inf }
  0xc6   :  { %v424_v1 = vsel %vm422_vm15, %v423_v42, %v421_v57  ;;  %v428_v37 = vsel %vm427_vm6, %v1193_v58, %v426_v46  ;;  %v304_v20 = vadd.f32 %v294_v62, %v925_v36  ;;  %v305_v54 = vadd.f32 %v295_v63, %v921_v35  ;;  %v486_v46 = vld [vmem:[%s1294_s2] sm:$0x3] }
  0xc7   :  { %v431_v50 = vsel %vm429_vm7, %v430_v53, %v428_v37  ;;  %v452_v23 = vsub.f32 %v354_v29, %v424_v1  ;;  %vm373_vm5 = vcmp.eq.f32.partialorder %v1222_v10, 0.0 }
  0xc8   :  { %v453_v51 = vsub.f32 %v361_v31, %v431_v50  ;;  %637 = vrsqrt.f32 %v304_v20  ;;  %vm434_vm8 = vcmp.eq.f32.partialorder %v304_v20, inf  ;;  %v437_v30 = vand.u32 2147483648, %v304_v20 }
  0xc9   :  { %v462_v11 = vmul.f32 %v452_v23, %v452_v23  ;;  %639 = vrsqrt.f32 %v305_v54  ;;  %vm436_vm9 = vcmp.eq.f32.partialorder %v304_v20, 0.0  ;;  %vm441_vm10 = vcmp.eq.f32.partialorder %v305_v54, inf }
  0xca   :  { %v463_v15 = vmul.f32 %v453_v51, %v453_v51  ;;  %v634_v2 = vpop.eup %633  ;;  %v444_v16 = vand.u32 2147483648, %v305_v54  ;;  %vm443_vm11 = vcmp.eq.f32.partialorder %v305_v54, 0.0 }
  0xcb   :  { %v489_v39 = vadd.f32 %v488_v19, %v462_v11  ;;  %v636_v5 = vpop.eup %635  ;;  %v363_v36 = vmul.f32 %v634_v2, %v1216_v22 }
  0xcc   :  { %v501_v61 = vadd.f32 %v500_v26, %v463_v15  ;;  %v370_v35 = vmul.f32 %v636_v5, %v1222_v10 }
  0xcd   :  { %v365_v6 = vsel %vm364_vm2, %v1216_v22, %v363_v36 }
  0xce   :  { %v372_v12 = vsel %vm371_vm4, %v1222_v10, %v370_v35  ;;  %v368_v14 = vsel %vm366_vm3, %v367_v38, %v365_v6 }
  0xcf   :  { %v375_v9 = vsel %vm373_vm5, %v374_v47, %v372_v12 }
  0xd2   :  { %v638_v3 = vpop.eup %637 }
  0xd3   :  { %v640_v58 = vpop.eup %639  ;;  %v433_v32 = vmul.f32 %v638_v3, %v304_v20 }
  0xd4   :  { %v440_v13 = vmul.f32 %v640_v58, %v305_v54 }
  0xd5   :  { %v435_v19 = vsel %vm434_vm8, %v304_v20, %v433_v32 }
  0xd6   :  { %v438_v55 = vsel %vm436_vm9, %v437_v30, %v435_v19  ;;  %v442_v48 = vsel %vm441_vm10, %v305_v54, %v440_v13 }
  0xd7   :  { %v445_v17 = vsel %vm443_vm11, %v444_v16, %v442_v48  ;;  %v454_v4 = vsub.f32 %v368_v14, %v438_v55 }
  0xd8   :  { %v455_v26 = vsub.f32 %v375_v9, %v445_v17 }
  0xd9   :  { %v464_v59 = vmul.f32 %v454_v4, %v454_v4 }
  0xda   :  { %v465_v27 = vmul.f32 %v455_v26, %v455_v26 }
  0xdb   :  { %v491_v7 = vsel %vm490_vm1, %v464_v59, 0.0 }
  0xdc   :  { %v492_v21 = vadd.f32 %v491_v7, %v489_v39  ;;  %v502_v10 = vsel %vm490_vm1, %v465_v27, 0.0 }
  0xdd   :  { %v503_v28 = vadd.f32 %v502_v10, %v501_v61 }
  0xde   :  { %v493_v40 = vrot.slane %v492_v21, 4 }
  0xdf   :  { %v504_v41 = vrot.slane %v503_v28, 4 }
  0xe0   :  { %v494_v34 = vadd.f32 %v493_v40, %v492_v21 }
  0xe1   :  { %v505_v22 = vadd.f32 %v504_v41, %v503_v28 }
  0xe2   :  { %v495_v42 = vrot.slane %v494_v34, 2 }
  0xe3   :  { %v506_v33 = vrot.slane %v505_v22, 2 }
  0xe4   :  { %v496_v43 = vadd.f32 %v495_v42, %v494_v34 }
  0xe5   :  { %v507_v53 = vadd.f32 %v506_v33, %v505_v22 }
  0xe6   :  { %v497_v44 = vrot.slane %v496_v43, 1 }
  0xe7   :  { %v508_v25 = vrot.slane %v507_v53, 1 }
  0xe8   :  { %v498_v24 = vadd.f32 %v497_v44, %v496_v43 }
  0xe9   :  { %v509_v45 = vadd.f32 %v508_v25, %v507_v53 }
  0xeb   :  { %v512_v60 = vcombine.low %v498_v24, %v509_v45 }
  0xed   :  { %v519_v0 = vrot.slane %v512_v60, %v823_v18 }
  0xef   :  { %v526_v49 = vrot.slane %v519_v0, %v823_v18 }
  0xf1   :  { %v528_v52 = vadd.f32 %v526_v49, %v486_v46 }
  0xf3   :  { %533 = vst.msk [vmem:[%s1294_s2] sm:$0x3] %vm685_vm0, %v528_v52 }

</bundles_post_ra>
